<compile_context>
chip_gen: v6e
topology: v6e:2x2x1
jax: 0.10.0
libtpu: 0.0.40
codegen_flags: <defaults>
</compile_context>

<pallas_src>
import jax
import jax.numpy as jnp
from jax.experimental import pallas as pl
from jax.experimental.pallas import tpu as pltpu


def _round_up(v, m):
    return (v + m - 1) // m * m


# Soft per-call VMEM budget: stays under the *default scoped* VMEM limits
# (16 MiB on v5e, 32 MiB on v6e/v7x; physical is 128/128/64 MiB) so the
# pipeline keeps its depth-2 double buffering without compile-time failures.
_SOFT_VMEM_BUDGET = 12 * 1024 * 1024


def _per_row_vmem_bytes(T, D, itemsize):
    """Padded VMEM bytes needed per batch row, accounting for (8,128) tiling."""
    pack = max(1, 4 // itemsize)              # elements per 32-bit sublane word
    d_pad = _round_up(D, 128)                 # lane padding of the feature dim
    t_pad = _round_up(T, 8 * pack)            # sublane padding of the time dim
    bytes_x = 2 * t_pad * d_pad * itemsize    # x block, double-buffered
    bytes_tmp = _round_up(T, 8) * d_pad * 4   # f32 (BB,T,D) weighted-mul temp
    bytes_out = 2 * d_pad * 4                 # (BB,D) out, double-buffered
    bytes_mask = 2 * _round_up(T, 128)        # (BB,T) int8 mask, double-buffered
    bytes_misc = 4 * _round_up(T, 128) * 4    # softmax intermediates (s,p,w,...)
    return bytes_x + bytes_tmp + bytes_out + bytes_mask + bytes_misc


def _choose_block_b(B, T, D, dtype):
    """Pick the batch-block size BB (must divide B, sublane-aligned)."""
    itemsize = jnp.dtype(dtype).itemsize
    pack = max(1, 4 // itemsize)
    sub_step = 8 * pack                       # 8 (f32), 16 (bf16), 32 (int8/fp8)
    per_row = _per_row_vmem_bytes(T, D, itemsize)

    aligned = [d for d in range(sub_step, B + 1, sub_step) if B % d == 0]
    fitting = [d for d in aligned if d * per_row <= _SOFT_VMEM_BUDGET]

    # Prefer >= 4 grid steps (v7x: 2 TCs x 2 in-flight blocks so each core can
    # still double-buffer), then >= 2 (single-TC pipelining), then anything.
    for pred in ((lambda d: B // d >= 4), (lambda d: B // d >= 2), (lambda d: True)):
        sel = [d for d in fitting if pred(d)]
        if sel:
            return max(sel)
    if aligned:
        # Nothing fits the soft budget: take the smallest aligned divisor and
        # let the wrapper raise vmem_limit_bytes.
        return min(aligned)
    return B  # tiny / awkward batch: one full-batch block


def _attention_block(x, keep):
    """x: (BB, T, D) in its native dtype; keep: (BB, T) bool or None.

    Returns the (BB, D) float32 attention output for this block.
    """
    # Feature sum s[b, t] = sum_d x[b, t, d]: lane reduce (XLU), f32 accumulate.
    s = jnp.sum(x, axis=-1, dtype=jnp.float32)                    # (BB, T)

    # softmax over T (numerically stable); EUP reciprocal + VPU multiply.
    m = jnp.max(s, axis=-1, keepdims=True)
    p = jnp.exp(s - m)
    w = p * pl.reciprocal(jnp.sum(p, axis=-1, keepdims=True), approx=True)

    if keep is not None:
        # Exact PyTorch module semantics: masked_fill(~mask, -inf) applied to
        # the already-softmaxed *probabilities*, then softmax AGAIN.
        # NB: a fully-masked row yields 0/0 -> NaN, same as PyTorch.
        w = jnp.where(keep, w, -jnp.inf)
        m2 = jnp.max(w, axis=-1, keepdims=True)
        p2 = jnp.exp(w - m2)
        w = p2 * pl.reciprocal(jnp.sum(p2, axis=-1, keepdims=True), approx=True)

    # Weighted sum over T: VPU broadcast-multiply + sublane reduce (XLU),
    # accumulated in f32.  No M=1 MXU matmuls, no per-row weight-tile loads.
    xw = w[:, :, None] * x.astype(jnp.float32)                    # (BB, T, D) f32
    return jnp.sum(xw, axis=1, dtype=jnp.float32)                 # (BB, D)


def _attn_kernel_nomask(x_ref, o_ref):
    o_ref[...] = _attention_block(x_ref[...], None).astype(o_ref.dtype)


def _attn_kernel_mask(x_ref, mask_ref, o_ref):
    keep = mask_ref[...] != 0                                     # (BB, T) bool
    o_ref[...] = _attention_block(x_ref[...], keep).astype(o_ref.dtype)


def attention_forward(x, mask=None, *, block_b=None):
    """x: (B, T, D) float. mask: optional (B, T', 1) bool/int with T' >= T.

    Returns (B, D), matching Attention.forward(x, mask).
    """
    B, T, D = x.shape
    itemsize = jnp.dtype(x.dtype).itemsize
    bb = block_b if block_b is not None else _choose_block_b(B, T, D, x.dtype)
    assert B % bb == 0, (B, bb)
    grid = (B // bb,)

    x_spec = pl.BlockSpec((bb, T, D), lambda b: (b, 0, 0))
    out_spec = pl.BlockSpec((bb, D), lambda b: (b, 0))
    out_shape = jax.ShapeDtypeStruct((B, D), x.dtype)

    # Only raise the scoped-VMEM limit when the padded footprint demands it;
    # otherwise keep the (generation-dependent) defaults.
    footprint = bb * _per_row_vmem_bytes(T, D, itemsize)
    vmem_limit = None
    if footprint > _SOFT_VMEM_BUDGET:
        vmem_limit = min(int(footprint * 3 // 2), 48 * 1024 * 1024)
    params = pltpu.CompilerParams(dimension_semantics=("parallel",),
                                  vmem_limit_bytes=vmem_limit)

    n_exp = B * T * (1 if mask is None else 2)
    cost = pl.CostEstimate(
        flops=3 * B * T * D,
        transcendentals=n_exp,
        bytes_accessed=B * T * D * itemsize + B * D * itemsize
        + (0 if mask is None else B * T),
    )

    if mask is None:
        return pl.pallas_call(
            _attn_kernel_nomask,
            out_shape=out_shape,
            grid=grid,
            in_specs=[x_spec],
            out_specs=out_spec,
            compiler_params=params,
            cost_estimate=cost,
        )(x)

    # Glue (plain JAX): mask.squeeze(-1)[:, :T] passed as a 2-D int8 array so
    # it rides the same batched pipeline as x with minimal HBM traffic.
    m2d = mask[..., 0][:, :T].astype(jnp.int8)
    mask_spec = pl.BlockSpec((bb, T), lambda b: (b, 0))
    return pl.pallas_call(
        _attn_kernel_mask,
        out_shape=out_shape,
        grid=grid,
        in_specs=[x_spec, mask_spec],
        out_specs=out_spec,
        compiler_params=params,
        cost_estimate=cost,
    )(x, m2d)


def _reference(x, mask=None):
    """Pure-JAX reference mirroring the PyTorch forward."""
    s = jnp.sum(x, axis=-1)
    w = jax.nn.softmax(s, axis=-1)
    if mask is not None:
        keep = mask[..., 0][:, : w.shape[1]]
        w = jnp.where(keep, w, -jnp.inf)
        w = jax.nn.softmax(w, axis=-1)
    return jnp.einsum("bt,btd->bd", w, x)


if __name__ == "__main__":
    # 16 batch rows -> BB = 8 (sublane-aligned), grid = (2,).
    B, T, D = 16, 8, 32
    key = jax.random.PRNGKey(0)
    kx, kw, kb, kmask = jax.random.split(key, 4)

    x = jax.random.normal(kx, (B, T, D), dtype=jnp.float32)

    # Deterministic init of the module's (unused-in-forward) Linear(input_dim, 1).
    # TODO(synk): nn.Linear(input_dim, 1) is never applied in forward(); kept
    # host-side only for parameter parity.
    bound = 1.0 / (D ** 0.5)
    attn_w = jax.random.uniform(kw, (1, D), minval=-bound, maxval=bound)  # noqa: F841
    attn_b = jax.random.uniform(kb, (1,), minval=-bound, maxval=bound)    # noqa: F841

    # Tolerances loosened slightly vs. a pure-f32 reference because the kernel
    # uses the EUP approximate reciprocal for softmax normalization.
    tol = dict(atol=5e-3, rtol=5e-3)

    # --- no-mask path (default forward) ---
    out = attention_forward(x)
    out = jax.block_until_ready(out)
    assert out.shape == (B, D)
    ref = _reference(x)
    assert jnp.allclose(out, ref, **tol), float(jnp.max(jnp.abs(out - ref)))

    # --- masked path ---
    mask = jax.random.bernoulli(kmask, 0.7, (B, T, 1))
    mask = mask.at[:, 0, 0].set(True)  # ensure at least one valid position per row
    out_m = attention_forward(x, mask)
    out_m = jax.block_until_ready(out_m)
    assert out_m.shape == (B, D)
    ref_m = _reference(x, mask)
    assert jnp.allclose(out_m, ref_m, **tol), float(jnp.max(jnp.abs(out_m - ref_m)))

    print("KERNEL_OK")
</pallas_src>

<mosaic_0001>
module attributes {stable_mosaic.version = 11 : i64} {
  func.func @_attn_kernel_nomask(%arg0: i32, %arg1: memref<8x8x32xf32, #tpu.memory_space<vmem>>, %arg2: memref<8x32xf32, #tpu.memory_space<vmem>>) attributes {dimension_semantics = [#tpu.dimension_semantics<parallel>], iteration_bounds = array<i64: 2>, scalar_prefetch = 0 : i64, scratch_operands = 0 : i64, tpu.core_type = #tpu.core_type<tc>, window_params = [{transform_indices = @transform_0, window_bounds = array<i64: 8, 8, 32>}, {transform_indices = @transform_1, window_bounds = array<i64: 8, 32>}]} {
    %c0 = arith.constant 0 : index
    %c0_0 = arith.constant 0 : index
    %c0_1 = arith.constant 0 : index
    %0 = vector.load %arg1[%c0, %c0_0, %c0_1] : memref<8x8x32xf32, #tpu.memory_space<vmem>>, vector<8x8x32xf32>
    %cst = arith.constant dense<0.000000e+00> : vector<8x8xf32>
    %1 = vector.multi_reduction <add>, %0, %cst [2] : vector<8x8x32xf32> to vector<8x8xf32>
    %cst_2 = arith.constant dense<0xFF800000> : vector<8xf32>
    %2 = vector.multi_reduction <maximumf>, %1, %cst_2 [1] : vector<8x8xf32> to vector<8xf32>
    %3 = vector.shape_cast %2 : vector<8xf32> to vector<8x1xf32>
    %4 = vector.broadcast %3 : vector<8x1xf32> to vector<8x8xf32>
    %5 = arith.subf %1, %4 : vector<8x8xf32>
    %6 = math.exp %5 : vector<8x8xf32>
    %cst_3 = arith.constant dense<0.000000e+00> : vector<8xf32>
    %7 = vector.multi_reduction <add>, %6, %cst_3 [1] : vector<8x8xf32> to vector<8xf32>
    %8 = vector.shape_cast %7 : vector<8xf32> to vector<8x1xf32>
    %9 = tpu.reciprocal %8 {approx = true} : vector<8x1xf32> -> vector<8x1xf32>
    %10 = vector.broadcast %9 : vector<8x1xf32> to vector<8x8xf32>
    %11 = arith.mulf %6, %10 : vector<8x8xf32>
    %12 = vector.shape_cast %11 : vector<8x8xf32> to vector<8x8x1xf32>
    %13 = vector.broadcast %12 : vector<8x8x1xf32> to vector<8x8x32xf32>
    %14 = arith.mulf %13, %0 : vector<8x8x32xf32>
    %cst_4 = arith.constant dense<0.000000e+00> : vector<8x32xf32>
    %15 = vector.multi_reduction <add>, %14, %cst_4 [1] : vector<8x8x32xf32> to vector<8x32xf32>
    %c0_5 = arith.constant 0 : index
    %c0_6 = arith.constant 0 : index
    %16 = vector.load %arg2[%c0_5, %c0_6] : memref<8x32xf32, #tpu.memory_space<vmem>>, vector<8x32xf32>
    tpu.vector_store %arg2[%c0_5, %c0_6], %15 {strides = array<i32>} : memref<8x32xf32, #tpu.memory_space<vmem>>, vector<8x32xf32>,
    return
  }
  func.func @transform_0(%arg0: i32) -> (i32, i32, i32) {
    %c0_i32 = arith.constant 0 : i32
    %c0_i32_0 = arith.constant 0 : i32
    %c0_i32_1 = arith.constant 0 : i32
    return %arg0, %c0_i32, %c0_i32_0 : i32, i32, i32
  }
  func.func @transform_1(%arg0: i32) -> (i32, i32) {
    %c0_i32 = arith.constant 0 : i32
    %c0_i32_0 = arith.constant 0 : i32
    return %arg0, %c0_i32 : i32, i32
  }
}

</mosaic_0001>

<bundles_post_ra>
// kernel: tpu_custom_call.1
= control target key start
LH: loop header
LB: loop body
LE: loop exit
PB: predicated region body
PF: predicated region fallthrough
CT: control target
= control target key end

     0   :  { %6 = vsyncpa [#allocation3], 0  ;;  %s1097_s0 = inlined_call_operand.hbm [shape: f32[16,8,32], index: 0, kind: input, shape index: {}]   ;;  %s1098_s1 = inlined_call_operand.hbm [shape: f32[16,32], index: 1, kind: output, shape index: {}]  }
   0x1   :  { %8 = vsyncpa [#allocation3 + $0x1], 0 }
   0x2   :  { %9 = vsyncpa [#allocation4], 0 }
   0x3   :  { %11 = vsyncpa [#allocation4 + $0x1], 0  ;;  %s817_s6 = smov 0   ;;  %s819_s7 = smov 0  }
   0x4   :  { %s821_s8 = smov 0   ;;  %s823_s9 = smov 0  }
   0x5 LB: > { %s838_s10 = sadd.s32 4294967295, %s800_s9   ;;  %s625_s11 = sadd.s32 4294967294, %s800_s9   ;;  %s800_s9 = sphi %s823_s9, %s1113_s9   ;;  %s796_s8 = sphi %s821_s8, %s1112_s8   ;;  %s792_s7 = sphi %s819_s7, %s1111_s7   ;;  %s788_s6 = sphi %s817_s6, %s1110_s6  }
   0x6   : > { %s842_s12 = sadd.s32 1, %s800_s9   ;;  %s24_s13 = sadd.s32 1, %s796_s8 }
   0x7   : > { %s21_s14 = ssub.s32 %s800_s9, %s842_s12  ;;  %p31_p0 = scmp.ne.s32.totalorder %s796_s8, %s792_s7 }
   0x8   : > { %p22_p1 = scmp.eq.s32.totalorder %s21_s14, 0  ;;  %p32_p2 = scmp.eq.s32.totalorder %s800_s9, 0 }
   0x9   : > { %p37_p3 = scmp.ne.s32.totalorder %s792_s7, %s788_s6  ;;  %p38_p4 = scmp.eq.s32.totalorder %s838_s10, 0 }
   0xa   : > { %s854_s15 = scalar_select %p22_p1, %s796_s8, %s24_s13  }
   0xb   : > { %p856_p5 = por %p32_p2, %p31_p0  ;;  %p860_p6 = por %p38_p4, %p37_p3 }
   0xc   : > { %p61_p7 = scmp.eq.s32.totalorder %s838_s10, 1  ;;  %p67_p8 = scmp.eq.s32.totalorder %s625_s11, 1 }
   0xd   : > { %s1102_s17 = scalar_select %p860_p6, 1, 0 }
   0xe   : > { %p651_p10 = scmp.lt.s32.totalorder %s800_s9, 2  ;;  %p867_p11 = por %p61_p7, %p31_p0 }
   0xf   : > { %p871_p12 = por %p67_p8, %p37_p3  ;;  %s87_s20 = sand.u32 1, %s796_s8  }
  0x10   : > { %s1103_s18 = scalar_select %p867_p11, 1, 0 }
  0x11   : > { %s1104_s19 = scalar_select %p871_p12, 1, 0 }
  0x12   : > { %s638_s21 = sshll.u32 %s800_s9, 10  ;;  %s628_s22 = sshll.u32 %s87_s20, 6 }
  0x13   : > { %s880_s25 = scalar_lea.hbm %s1097_s0, %s638_s21  ;;  %s91_s26 = scalar_lea.vmem [#allocation2], %s628_s22 }
  0x14   : > { %s98_s27 = sshll.u32 %s91_s26, 4  ;;  %p884_p13 = pnand %p651_p10, %p856_p5  ;;  %s888_s27 = int_to_ptr.vmem [resolvable:$true] %s98_s27 }
  0x15   : > { %s890_s29 = scalar_lea.sflag [#allocation3], %s87_s20  ;;  %s708_s30 = scalar_lea.hbm %s880_s25, 1024 }
  0x16   : > { %p709_p0 = scmp.ne.s32.totalorder %s880_s25, %s708_s30  ;;  %p710_p1 = pneg %p884_p13 }
  0x17   : > { %s713_s4 = scalar_lea.hbm %s1097_s0, 2048  ;;  %p714_p4 = scmp.lt.s32.totalorder %s880_s25, %s1097_s0 }
  0x18   : > { %p711_p2 = pnand %p710_p1, %p709_p0  ;;  %p715_p5 = scmp.lt.s32.totalorder %s713_s4, %s708_s30 }
  0x1a   : > { %p712_p3 = pneg %p711_p2  ;;  %p716_p7 = por %p715_p5, %p714_p4 }
  0x1c   : > { %p717_p8 = pnand %p716_p7, %p712_p3 }
  0x1e   : > { %720 = shalt.err (!%p717_p8)
}
  0x1f   : > { %s721_s13 = scalar_lea.vmem %s888_s27, 1024  ;;  %s802_s14 = smov [#allocation2]  }
  0x20   : > { %p722_p10 = scmp.ne.s32.totalorder %s888_s27, %s721_s13  ;;  %s726_s16 = sshll.u32 %s802_s14, 4  ;;  %s727_s16 = int_to_ptr.vmem [resolvable:$false] %s726_s16 }
  0x21   : > { %s728_s20 = scalar_lea.vmem %s727_s16, 2048  ;;  %p729_p2 = scmp.lt.s32.totalorder %s888_s27, %s727_s16 }
  0x22   : > { %p724_p9 = pnand %p722_p10, %p710_p1  ;;  %p730_p12 = scmp.lt.s32.totalorder %s728_s20, %s721_s13 }
  0x24   : > { %p725_p0 = pneg %p724_p9  ;;  %p731_p11 = por %p730_p12, %p729_p2 }
  0x26   : > { %p732_p6 = pnand %p731_p11, %p725_p0 }
  0x28   : > { %735 = shalt.err (!%p732_p6)
}
  0x29   : > { %s803_s21 = smov 128   ;;  %s804_s22 = smov 8  }
  0x2a   : > { %646 = dma.hbm_to_vmem [thread:$0]  (!%p884_p13), %s880_s25, 1024, %s888_s27, %s890_s29, %s803_s21, %s803_s21, %s804_s22  }
  0x2b   : > { %p631_p9 = scmp.ge.s32.totalorder %s800_s9, 1  ;;  %p106_p1 = scmp.lt.s32.totalorder %s800_s9, 3 }
  0x2d   : > { %p107_p3 = pnand %p631_p9, %p106_p1 }
  0x2e   : > { %s914_s23 = sand.u32 (!%p107_p3), 1, %s792_s7   ;;  %p1106_p6 = scmp.ne.s32.totalorder (!%p107_p3), %s1102_s17, 0 }
  0x2f   : > { %110 = sbr.rel (%p107_p3) target bundleno = 857 (0x359), region = 24  ;;  %s632_s24 = sshll.u32 (!%p107_p3), %s914_s23, 6 }
  0x30   : > { %s113_s26 = scalar_lea.sflag (!%p107_p3), [#allocation3], %s914_s23  ;;  %s116_s30 = scalar_lea.vmem (!%p107_p3), [#allocation2], %s632_s24 }
  0x34   : > { %779 = dma.done.wait (%p1106_p6), %s113_s26, 1024  }
  0x35   : > { %781 = vsyncadd (%p1106_p6), %s113_s26, 4294966272  ;;  %vm144_vm0 = vcmask 261120   ;;  %v922_v0 = vld [vmem:[%s116_s30] sm:$0xff]  ;;  %v924_v1 = vld [vmem:[%s116_s30 + $0x10] sm:$0xff]  ;;  %v177_v16 = vlaneseq  ;;  %vm211_vm1 = vcmask 1041409   ;;  %vm213_vm2 = vcmask 1042434  }
  0x36   : > { %v926_v2 = vld [vmem:[%s116_s30 + $0x8] sm:$0xff]  ;;  %v145_v3 = vsel %vm144_vm0, %v922_v0, 0.0  ;;  %v151_v4 = vsel %vm144_vm0, %v924_v1, 0.0  ;;  %v932_v5 = vld [vmem:[%s116_s30 + $0x18] sm:$0xff]  ;;  %v938_v8 = vld [vmem:[%s116_s30 + $0x20] sm:$0xff]  ;;  %vm215_vm3 = vcmask 1043459  }
  0x37   : > { %146 = vadd.xlane.f32.xlu0 %v145_v3  ;;  %152 = vadd.xlane.f32.xlu1 %v151_v4  ;;  %v148_v6 = vsel %vm144_vm0, %v926_v2, 0.0  ;;  %v154_v7 = vsel %vm144_vm0, %v932_v5, 0.0  ;;  %v940_v9 = vld [vmem:[%s116_s30 + $0x28] sm:$0xff]  ;;  %v157_v10 = vsel %vm144_vm0, %v938_v8, 0.0  ;;  %v946_v12 = vld [vmem:[%s116_s30 + $0x30] sm:$0xff]  ;;  %v948_v13 = vld [vmem:[%s116_s30 + $0x38] sm:$0xff] }
  0x38   : > { %v160_v11 = vsel %vm144_vm0, %v940_v9, 0.0  ;;  %v163_v14 = vsel %vm144_vm0, %v946_v12, 0.0  ;;  %v166_v15 = vsel %vm144_vm0, %v948_v13, 0.0  ;;  %v178_v17 = vand.u32 127, %v177_v16  ;;  %s633_s17 = sshll.u32 %s914_s23, 3  ;;  %s635_s25 = sshll.u32 %s838_s10, 7 }
  0x39   : > { %v954_v18 = vshrl.u32 %v177_v16, 7  ;;  %vm217_vm4 = vcmask 1044484   ;;  %vm219_vm5 = vcmask 1045509   ;;  %vm221_vm6 = vcmask 1046534   ;;  %s134_s27 = scalar_lea.vmem [#allocation5], %s633_s17  ;;  %s1058_s3 = scalar_lea.hbm %s1098_s1, %s635_s25 }
  0x3a   : > { %vm223_vm7 = vcmask 1047559   ;;  %vm226_vm8 = vcmask 64512   ;;  %v805_v44 = vmov 0   ;;  %s555_s28 = sshll.u32 %s134_s27, 4  ;;  %s542_s10 = scalar_lea.sflag [#allocation4], %s914_s23  ;;  %s556_s28 = int_to_ptr.vmem [resolvable:$true] %s555_s28 }
  0x3b   : > { %149 = vadd.xlane.f32.xlu0 %v148_v6  ;;  %155 = vadd.xlane.f32.xlu1 %v154_v7  ;;  %v957_v21 = vsub.s32 %v178_v17, %v954_v18  ;;  %v233_v45 = vsub.s32 0, %v954_v18  ;;  %v237_v46 = vsub.s32 1, %v954_v18  ;;  %v241_v47 = vsub.s32 2, %v954_v18  ;;  %s736_s4 = scalar_lea.vmem %s556_s28, 128  ;;  %p1107_p12 = scmp.ne.s32.totalorder %s1103_s18, 0 }
  0x3c   : > { %689 = vset.pattern.permute.xlu0 %v805_v44  ;;  %688 = vset.pattern.permute.xlu1 %v805_v44  ;;  %v245_v48 = vsub.s32 3, %v954_v18  ;;  %v249_v53 = vsub.s32 4, %v954_v18  ;;  %v253_v60 = vsub.s32 5, %v954_v18  ;;  %v257_v3 = vsub.s32 6, %v954_v18  ;;  %p737_p11 = scmp.ne.s32.totalorder %s556_s28, %s736_s4  ;;  %s806_s5 = smov [#allocation5]  }
  0x3d   : > { %s740_s11 = sshll.u32 %s806_s5, 4  ;;  %s741_s11 = int_to_ptr.vmem [resolvable:$false] %s740_s11 }
  0x3e   : > { %p738_p13 = pnand %p737_p11, %p1107_p12  ;;  %s742_s13 = scalar_lea.vmem %s741_s11, 256 }
  0x3f   : > { %158 = vadd.xlane.f32.xlu0 %v157_v10  ;;  %161 = vadd.xlane.f32.xlu1 %v160_v11  ;;  %v261_v10 = vsub.s32 7, %v954_v18  ;;  %p743_p5 = scmp.lt.s32.totalorder %s556_s28, %s741_s11  ;;  %p744_p7 = scmp.lt.s32.totalorder %s742_s13, %s736_s4 }
  0x40   : > { %p739_p4 = pneg %p738_p13 }
  0x41   : > { %p745_p8 = por %p744_p7, %p743_p5 }
  0x43   : > { %164 = vadd.xlane.f32.xlu0 %v163_v14  ;;  %167 = vadd.xlane.f32.xlu1 %v166_v15  ;;  %p746_p10 = pnand %p745_p8, %p739_p4 }
  0xc0   : > { %v147_v19 = vpop.xlane.xlu0 %146  ;;  %v153_v20 = vpop.xlane.xlu1 %152 }
  0xc1   : > { %v182_v24 = vrot.slane %v147_v19, %v957_v21  ;;  %v190_v27 = vrot.slane %v153_v20, %v957_v21 }
  0xc4   : > { %v150_v22 = vpop.xlane.xlu0 %149  ;;  %v156_v23 = vpop.xlane.xlu1 %155 }
  0xc5   : > { %v186_v25 = vrot.slane %v150_v22, %v957_v21  ;;  %v194_v26 = vrot.slane %v156_v23, %v957_v21 }
  0xc7   : > { %v212_v28 = vsel %vm211_vm1, %v186_v25, %v182_v24 }
  0xc8   : > { %v214_v29 = vsel %vm213_vm2, %v190_v27, %v212_v28  ;;  %v159_v30 = vpop.xlane.xlu0 %158  ;;  %v162_v31 = vpop.xlane.xlu1 %161 }
  0xc9   : > { %v216_v32 = vsel %vm215_vm3, %v194_v26, %v214_v29  ;;  %v198_v33 = vrot.slane %v159_v30, %v957_v21  ;;  %v202_v34 = vrot.slane %v162_v31, %v957_v21 }
  0xcb   : > { %v218_v35 = vsel %vm217_vm4, %v198_v33, %v216_v32 }
  0xcc   : > { %v165_v36 = vpop.xlane.xlu0 %164  ;;  %v168_v37 = vpop.xlane.xlu1 %167  ;;  %v220_v40 = vsel %vm219_vm5, %v202_v34, %v218_v35 }
  0xcd   : > { %v206_v38 = vrot.slane %v165_v36, %v957_v21  ;;  %v210_v39 = vrot.slane %v168_v37, %v957_v21 }
  0xcf   : > { %v222_v41 = vsel %vm221_vm6, %v206_v38, %v220_v40 }
  0xd0   : > { %v224_v42 = vsel %vm223_vm7, %v210_v39, %v222_v41 }
  0xd1   : > { %v227_v43 = vsel %vm226_vm8, %v224_v42, -inf }
  0xd2   : > { %228 = vmax.xlane.f32.xlu0 %v227_v43 }
 0x15b   : > { %v229_v49 = vpop.xlane.xlu0 %228 }
 0x15c   : > { %v234_v50 = vrot.slane %v229_v49, %v233_v45  ;;  %v238_v51 = vrot.slane %v229_v49, %v237_v46  ;;  %v242_v52 = vrot.slane %v229_v49, %v241_v47  ;;  %v246_v54 = vrot.slane %v229_v49, %v245_v48 }
 0x15d   : > { %v250_v61 = vrot.slane %v229_v49, %v249_v53  ;;  %v254_v4 = vrot.slane %v229_v49, %v253_v60  ;;  %v258_v11 = vrot.slane %v229_v49, %v257_v3  ;;  %v262_v16 = vrot.slane %v229_v49, %v261_v10 }
 0x15e   : > { %v271_v55 = vsub.f32 %v147_v19, %v234_v50  ;;  %v272_v56 = vsub.f32 %v150_v22, %v238_v51  ;;  %v273_v57 = vsub.f32 %v153_v20, %v242_v52  ;;  %v274_v62 = vsub.f32 %v156_v23, %v246_v54 }
 0x15f   : > { %v275_v6 = vsub.f32 %v159_v30, %v250_v61  ;;  %v276_v14 = vsub.f32 %v162_v31, %v254_v4  ;;  %v277_v17 = vsub.f32 %v165_v36, %v258_v11  ;;  %v278_v23 = vsub.f32 %v168_v37, %v262_v16 }
 0x160   : > { %v279_v58 = vmul.f32 1.442695, %v271_v55  ;;  %v281_v59 = vmul.f32 1.442695, %v272_v56  ;;  %v283_v63 = vmul.f32 1.442695, %v273_v57 }
 0x161   : > { %v285_v7 = vmul.f32 1.442695, %v274_v62  ;;  %v287_v15 = vmul.f32 1.442695, %v275_v6  ;;  %v289_v19 = vmul.f32 1.442695, %v276_v14 }
 0x162   : > { %690 = vpow2.f32 %v279_v58  ;;  %v291_v24 = vmul.f32 1.442695, %v277_v17  ;;  %v293_v26 = vmul.f32 1.442695, %v278_v23 }
 0x163   : > { %692 = vpow2.f32 %v281_v59 }
 0x164   : > { %694 = vpow2.f32 %v283_v63 }
 0x165   : > { %696 = vpow2.f32 %v285_v7 }
 0x166   : > { %698 = vpow2.f32 %v287_v15 }
 0x167   : > { %700 = vpow2.f32 %v289_v19 }
 0x168   : > { %702 = vpow2.f32 %v291_v24 }
 0x169   : > { %704 = vpow2.f32 %v293_v26 }
 0x16f   : > { %v691_v20 = vpop.eup %690 }
 0x170   : > { %v693_v22 = vpop.eup %692  ;;  %304 = vperm.xlu1 %688, %v691_v20  }
 0x171   : > { %307 = vperm.xlu0 %689, %v693_v22   ;;  %v695_v25 = vpop.eup %694 }
 0x172   : > { %v697_v27 = vpop.eup %696 }
 0x173   : > { %v699_v28 = vpop.eup %698 }
 0x174   : > { %310 = vperm.xlu1 %688, %v695_v25   ;;  %v701_v29 = vpop.eup %700 }
 0x175   : > { %v703_v30 = vpop.eup %702 }
 0x176   : > { %v705_v31 = vpop.eup %704 }
 0x178   : > { %313 = vperm.xlu1 %688, %v697_v27  }
 0x17c   : > { %316 = vperm.xlu1 %688, %v699_v28  }
 0x180   : > { %319 = vperm.xlu1 %688, %v701_v29  }
 0x184   : > { %322 = vperm.xlu1 %688, %v703_v30  }
 0x188   : > { %325 = vperm.xlu1 %688, %v705_v31  }
 0x1eb   : > { %v305_v32 = vpop.permute.xlu1 %304 }
 0x1ec   : > { %v308_v36 = vpop.permute.xlu0 %307  ;;  %v330_v39 = vrot.slane %v305_v32, %v957_v21 }
 0x1ed   : > { %v334_v38 = vrot.slane %v308_v36, %v957_v21 }
 0x1ef   : > { %v311_v33 = vpop.permute.xlu1 %310  ;;  %v359_v44 = vsel %vm211_vm1, %v334_v38, %v330_v39 }
 0x1f0   : > { %v338_v40 = vrot.slane %v311_v33, %v957_v21 }
 0x1f2   : > { %v360_v50 = vsel %vm213_vm2, %v338_v40, %v359_v44 }
 0x1f3   : > { %v314_v34 = vpop.permute.xlu1 %313 }
 0x1f4   : > { %v342_v41 = vrot.slane %v314_v34, %v957_v21 }
 0x1f6   : > { %v361_v52 = vsel %vm215_vm3, %v342_v41, %v360_v50 }
 0x1f7   : > { %v317_v35 = vpop.permute.xlu1 %316 }
 0x1f8   : > { %v346_v42 = vrot.slane %v317_v35, %v957_v21 }
 0x1fa   : > { %v362_v54 = vsel %vm217_vm4, %v346_v42, %v361_v52 }
 0x1fb   : > { %v320_v37 = vpop.permute.xlu1 %319 }
 0x1fc   : > { %v350_v49 = vrot.slane %v320_v37, %v957_v21 }
 0x1fe   : > { %v363_v56 = vsel %vm219_vm5, %v350_v49, %v362_v54 }
 0x1ff   : > { %v323_v43 = vpop.permute.xlu1 %322 }
 0x200   : > { %v354_v51 = vrot.slane %v323_v43, %v957_v21 }
 0x202   : > { %v364_v58 = vsel %vm221_vm6, %v354_v51, %v363_v56 }
 0x203   : > { %v326_v55 = vpop.permute.xlu1 %325 }
 0x204   : > { %v358_v57 = vrot.slane %v326_v55, %v957_v21 }
 0x206   : > { %v365_v59 = vsel %vm223_vm7, %v358_v57, %v364_v58 }
 0x207   : > { %v367_v61 = vsel %vm226_vm8, %v365_v59, 0.0 }
 0x208   : > { %368 = vadd.xlane.f32.xlu1 %v367_v61 }
 0x291   : > { %v369_v62 = vpop.xlane.xlu1 %368 }
 0x292   : > { %706 = vrcp.f32 %v369_v62 }
 0x29f   : > { %v707_v63 = vpop.eup %706 }
 0x2a0   : > { %v375_v4 = vrot.slane %v707_v63, %v233_v45  ;;  %v379_v7 = vrot.slane %v707_v63, %v237_v46  ;;  %v383_v21 = vrot.slane %v707_v63, %v241_v47  ;;  %v387_v15 = vrot.slane %v707_v63, %v245_v48 }
 0x2a1   : > { %v391_v17 = vrot.slane %v707_v63, %v249_v53  ;;  %v395_v46 = vrot.slane %v707_v63, %v253_v60  ;;  %v399_v47 = vrot.slane %v707_v63, %v257_v3  ;;  %v403_v48 = vrot.slane %v707_v63, %v261_v10 }
 0x2a2   : > { %v412_v6 = vmul.f32 %v691_v20, %v375_v4  ;;  %v413_v11 = vmul.f32 %v693_v22, %v379_v7  ;;  %v414_v14 = vmul.f32 %v695_v25, %v383_v21  ;;  %v415_v16 = vmul.f32 %v697_v27, %v387_v15 }
 0x2a3   : > { %v416_v45 = vmul.f32 %v699_v28, %v391_v17  ;;  %v417_v19 = vmul.f32 %v701_v29, %v395_v46  ;;  %v418_v20 = vmul.f32 %v703_v30, %v399_v47  ;;  %v419_v22 = vmul.f32 %v705_v31, %v403_v48 }
 0x2a4   : > { %422 = vperm.xlu0 %689, %v412_v6  }
 0x2a8   : > { %427 = vperm.xlu0 %689, %v413_v11  }
 0x2ac   : > { %432 = vperm.xlu0 %689, %v414_v14  }
 0x2b0   : > { %437 = vperm.xlu0 %689, %v415_v16  }
 0x2b4   : > { %442 = vperm.xlu0 %689, %v416_v45  }
 0x2b8   : > { %447 = vperm.xlu0 %689, %v417_v19  }
 0x2bc   : > { %452 = vperm.xlu0 %689, %v418_v20  }
 0x2c0   : > { %457 = vperm.xlu0 %689, %v419_v22  }
 0x31f   : > { %v423_v23 = vpop.permute.xlu0 %422 }
 0x320   : > { %v460_v60 = vmul.f32 %v423_v23, %v922_v0 }
 0x322   : > { %v468_v18 = vsel %vm144_vm0, %v460_v60, 0.0 }
 0x323   : > { %v428_v53 = vpop.permute.xlu0 %427  ;;  %v469_v32 = vrot.slane %v468_v18, 4 }
 0x324   : > { %v461_v24 = vmul.f32 %v428_v53, %v926_v2 }
 0x325   : > { %v470_v36 = vadd.f32 %v469_v32, %v468_v18 }
 0x326   : > { %v475_v27 = vsel %vm144_vm0, %v461_v24, 0.0 }
 0x327   : > { %v433_v25 = vpop.permute.xlu0 %432  ;;  %v476_v29 = vrot.slane %v475_v27, 4  ;;  %v471_v44 = vrot.slane %v470_v36, 2 }
 0x328   : > { %v462_v26 = vmul.f32 %v433_v25, %v924_v1 }
 0x329   : > { %v477_v34 = vadd.f32 %v476_v29, %v475_v27  ;;  %v472_v58 = vadd.f32 %v471_v44, %v470_v36 }
 0x32a   : > { %v482_v3 = vsel %vm144_vm0, %v462_v26, 0.0 }
 0x32b   : > { %v438_v28 = vpop.permute.xlu0 %437  ;;  %v483_v30 = vrot.slane %v482_v3, 4  ;;  %v473_v14 = vrot.slane %v472_v58, 1 }
 0x32c   : > { %v463_v10 = vmul.f32 %v438_v28, %v932_v5  ;;  %v478_v5 = vrot.slane %v477_v34, 2 }
 0x32d   : > { %v484_v1 = vadd.f32 %v483_v30, %v482_v3  ;;  %v474_v22 = vadd.f32 %v473_v14, %v472_v58 }
 0x32e   : > { %v489_v31 = vsel %vm144_vm0, %v463_v10, 0.0  ;;  %v479_v54 = vadd.f32 %v478_v5, %v477_v34 }
 0x32f   : > { %v490_v2 = vrot.slane %v489_v31, 4  ;;  %v443_v33 = vpop.permute.xlu0 %442  ;;  %v485_v42 = vrot.slane %v484_v1, 2 }
 0x330   : > { %v464_v0 = vmul.f32 %v443_v33, %v938_v8  ;;  %v480_v6 = vrot.slane %v479_v54, 1 }
 0x331   : > { %v491_v37 = vadd.f32 %v490_v2, %v489_v31  ;;  %v486_v56 = vadd.f32 %v485_v42, %v484_v1 }
 0x332   : > { %v496_v35 = vsel %vm144_vm0, %v464_v0, 0.0  ;;  %v481_v46 = vadd.f32 %v480_v6, %v479_v54 }
 0x333   : > { %v497_v38 = vrot.slane %v496_v35, 4  ;;  %v448_v39 = vpop.permute.xlu0 %447  ;;  %v492_v49 = vrot.slane %v491_v37, 2  ;;  %v487_v21 = vrot.slane %v486_v56, 1 }
 0x334   : > { %v465_v40 = vmul.f32 %v448_v39, %v940_v9  ;;  %v532_v25 = vsel %vm211_vm1, %v481_v46, %v474_v22 }
 0x335   : > { %v498_v41 = vadd.f32 %v497_v38, %v496_v35  ;;  %v493_v59 = vadd.f32 %v492_v49, %v491_v37  ;;  %v488_v48 = vadd.f32 %v487_v21, %v486_v56 }
 0x336   : > { %v503_v43 = vsel %vm144_vm0, %v465_v40, 0.0 }
 0x337   : > { %v504_v50 = vrot.slane %v503_v43, 4  ;;  %v453_v51 = vpop.permute.xlu0 %452  ;;  %v499_v8 = vrot.slane %v498_v41, 2  ;;  %v494_v15 = vrot.slane %v493_v59, 1  ;;  %v533_v27 = vsel %vm213_vm2, %v488_v48, %v532_v25 }
 0x338   : > { %v466_v52 = vmul.f32 %v453_v51, %v946_v12 }
 0x339   : > { %v505_v55 = vadd.f32 %v504_v50, %v503_v43  ;;  %v500_v63 = vadd.f32 %v499_v8, %v498_v41 }
 0x33a   : > { %v510_v57 = vsel %vm144_vm0, %v466_v52, 0.0 }
 0x33b   : > { %v506_v9 = vrot.slane %v505_v55, 2  ;;  %v511_v61 = vrot.slane %v510_v57, 4  ;;  %v458_v62 = vpop.permute.xlu0 %457  ;;  %v501_v45 = vrot.slane %v500_v63, 1 }
 0x33c   : > { %v467_v4 = vmul.f32 %v458_v62, %v948_v13  ;;  %v495_v13 = vadd.f32 %v494_v15, %v493_v59 }
 0x33d   : > { %v507_v7 = vadd.f32 %v506_v9, %v505_v55  ;;  %v512_v11 = vadd.f32 %v511_v61, %v510_v57  ;;  %v502_v24 = vadd.f32 %v501_v45, %v500_v63 }
 0x33e   : > { %v517_v12 = vsel %vm144_vm0, %v467_v4, 0.0  ;;  %v534_v28 = vsel %vm215_vm3, %v495_v13, %v533_v27 }
 0x33f   : > { %v513_v16 = vrot.slane %v512_v11, 2  ;;  %v518_v17 = vrot.slane %v517_v12, 4  ;;  %v508_v19 = vrot.slane %v507_v7, 1  ;;  %v535_v10 = vsel %vm217_vm4, %v502_v24, %v534_v28 }
 0x341   : > { %v514_v47 = vadd.f32 %v513_v16, %v512_v11  ;;  %v519_v20 = vadd.f32 %v518_v17, %v517_v12  ;;  %v509_v60 = vadd.f32 %v508_v19, %v507_v7 }
 0x343   : > { %v515_v23 = vrot.slane %v514_v47, 1  ;;  %v520_v53 = vrot.slane %v519_v20, 2  ;;  %v536_v29 = vsel %vm219_vm5, %v509_v60, %v535_v10 }
 0x345   : > { %v521_v26 = vadd.f32 %v520_v53, %v519_v20  ;;  %v516_v3 = vadd.f32 %v515_v23, %v514_v47 }
 0x347   : > { %v522_v18 = vrot.slane %v521_v26, 1  ;;  %v537_v31 = vsel %vm221_vm6, %v516_v3, %v536_v29 }
 0x349   : > { %v523_v30 = vadd.f32 %v522_v18, %v521_v26 }
 0x34b   : > { %v538_v32 = vsel %vm223_vm7, %v523_v30, %v537_v31 }
 0x34c   : > { %540 = vst.msk [vmem:[%s134_s27] sm:$0xff] %vm144_vm0, %v538_v32 }
 0x34d   : > { %749 = shalt.err (!%p746_p10)
}
 0x34e   : > { %s750_s14 = scalar_lea.hbm %s1058_s3, 128  ;;  %s754_s21 = scalar_lea.hbm %s1098_s1, 256 }
 0x34f   : > { %p751_p0 = scmp.ne.s32.totalorder %s1058_s3, %s750_s14  ;;  %p755_p1 = scmp.lt.s32.totalorder %s1058_s3, %s1098_s1 }
 0x350   : > { %p756_p3 = scmp.lt.s32.totalorder %s754_s21, %s750_s14 }
 0x351   : > { %p752_p2 = pnand %p751_p0, %p1107_p12 }
 0x352   : > { %p757_p6 = por %p756_p3, %p755_p1 }
 0x353   : > { %p753_p9 = pneg %p752_p2 }
 0x355   : > { %p758_p11 = pnand %p757_p6, %p753_p9 }
 0x357   : > { %761 = shalt.err (!%p758_p11)
}
 0x358   : > { %641 = dma.vmem_to_hbm [thread:$0]  (%p1107_p12), %s556_s28, 128, %s1058_s3, %s542_s10  }
 0x359 PF: > { %s567_s24 = sand.u32 1, %s788_s6   ;;  %p1108_p13 = scmp.ne.s32.totalorder %s1104_s19, 0 }
 0x35a   : > { %p1109_p4 = scmp.ge.s32.totalorder %s800_s9, 2  ;;  %s568_s26 = scalar_lea.sflag [#allocation4], %s567_s24 }
 0x35c   : > { %p648_p5 = pnand %p1109_p4, %p1108_p13 }
 0x35e   : > { %p649_p7 = pneg %p648_p5 }
 0x360   : > { %783 = dma.done.wait (%p649_p7), %s568_s26, 128  }
 0x361   : > { %785 = vsyncadd (%p649_p7), %s568_s26, 4294967168  ;;  %p14_p8 = scmp.ge.s32.totalorder %s842_s12, 4   ;;  %s1110_s6 = smov %s792_s7 }
 0x362   : > { %s1111_s7 = smov %s796_s8  ;;  %s1112_s8 = smov %s854_s15 }
 0x363   : > { %s1113_s9 = smov %s842_s12  ;;  %16 = sbr.rel (!%p14_p8) target bundleno = 5 (0x5), region = 69 }
 0x368   :  { %573 = vsyncpa [#allocation3], 1 }
 0x369   :  { %575 = vsyncpa [#allocation3 + $0x1], 1 }
 0x36a   :  { %576 = vsyncpa [#allocation4], 1 }
 0x36b   :  { %578 = vsyncpa [#allocation4 + $0x1], 1 }

</bundles_post_ra>
